<compile_context>
chip_gen: v7x
topology: tpu7x:2x2x1
jax: 0.10.0
libtpu: 0.0.40
codegen_flags: <defaults>
</compile_context>

<pallas_src>
import jax
import jax.numpy as jnp
from jax.experimental import pallas as pl
from jax.experimental.pallas import tpu as pltpu


_LANE = 128


def _cdiv(a, b):
    return (a + b - 1) // b


def _round_up(a, m):
    return _cdiv(a, m) * m


def _choose_tile_rows(rows_needed, tr_max):
    """Pick the sublane-row tile (second-to-last block dim)."""
    if rows_needed <= 8:
        # Tiny batch: one full-extent block (allowed: dim equals array dim).
        return max(rows_needed, 1)
    tr = _round_up(min(tr_max, rows_needed), 8)
    # v7x has 2 TensorCores: make sure the "parallel" grid axis has >= 2
    # blocks when there is enough work to split.
    if rows_needed >= 16 and _cdiv(rows_needed, tr) < 2:
        tr = _round_up(_cdiv(rows_needed, 2), 8)
    return tr


def _linear2_sigmoid_kernel(w_ref, x_ref, o_ref):
    # w_ref: SMEM (2,) f32            -- the two weight scalars
    # x_ref: VMEM (2, TR, 128) f32    -- batch dense on sublanes + lanes
    # o_ref: VMEM (1, TR, 128) f32
    w0 = w_ref[0]
    w1 = w_ref[1]
    x0 = x_ref[0]                      # (TR, 128)
    x1 = x_ref[1]                      # (TR, 128)
    y = x0 * w0 + x1 * w1              # pure VPU, full vregs
    o_ref[0] = jax.nn.sigmoid(y).astype(o_ref.dtype)


def model_forward(x, weight, *, tile_rows=4096):
    """x: [B, 2] float32, weight: [1, 2] float32 (PyTorch nn.Linear layout)."""
    b, in_f = x.shape
    out_f, in_f_w = weight.shape
    assert in_f == 2 and in_f_w == 2 and out_f == 1, "Model is Linear(2,1,bias=False)"

    rows_needed = _cdiv(b, _LANE)
    tr = _choose_tile_rows(rows_needed, tile_rows)
    n_blocks = _cdiv(rows_needed, tr)
    rows = n_blocks * tr
    b_pad = rows * _LANE

    # Feature-major, dense (2, rows, 128) layout: batch spans sublanes+lanes.
    # TODO(synk): accept X already feature-major ([2, B]) from the producer to
    # drop this wrapper-side transpose/pad HBM pass.
    x_t = x.astype(jnp.float32).T                          # (2, B)
    if b_pad != b:
        x_t = jnp.pad(x_t, ((0, 0), (0, b_pad - b)))
    x_t = x_t.reshape(in_f, rows, _LANE)

    w_flat = weight.astype(jnp.float32).reshape(-1)        # (2,) -> SMEM

    out = pl.pallas_call(
        _linear2_sigmoid_kernel,
        out_shape=jax.ShapeDtypeStruct((out_f, rows, _LANE), jnp.float32),
        grid_spec=pltpu.PrefetchScalarGridSpec(
            num_scalar_prefetch=0,
            grid=(n_blocks,),
            in_specs=[
                # Two weight scalars live in SMEM: no VMEM tile / DMA stream.
                pl.BlockSpec(memory_space=pltpu.MemorySpace.SMEM),
                # Dense (2, TR, 128) input tile, tiled along the row axis.
                pl.BlockSpec((in_f, tr, _LANE), lambda i: (0, i, 0)),
            ],
            out_specs=pl.BlockSpec((out_f, tr, _LANE), lambda i: (0, i, 0)),
        ),
        compiler_params=pltpu.CompilerParams(
            dimension_semantics=("parallel",),
            vmem_limit_bytes=48 * 1024 * 1024,
        ),
    )(w_flat, x_t)

    # Back to the PyTorch output layout [B, 1].
    return out.reshape(b_pad)[:b].reshape(b, out_f)


def model_forward_ref(x, weight):
    return jax.nn.sigmoid(x @ weight.T)


if __name__ == "__main__":
    key = jax.random.PRNGKey(0)
    kx, kw, kx2 = jax.random.split(key, 3)

    B, IN, OUT = 8, 2, 1
    x = jax.random.normal(kx, (B, IN), dtype=jnp.float32)
    # Deterministic init mimicking nn.Linear's uniform(-1/sqrt(in), 1/sqrt(in))
    bound = 1.0 / jnp.sqrt(jnp.float32(IN))
    weight = jax.random.uniform(kw, (OUT, IN), minval=-bound, maxval=bound,
                                dtype=jnp.float32)

    out = jax.block_until_ready(model_forward(x, weight))
    ref = model_forward_ref(x, weight)
    assert out.shape == (B, OUT)
    assert jnp.allclose(out, ref, atol=1e-5, rtol=1e-5)

    # Secondary check: non-multiple-of-128 batch exercising padding and a
    # multi-block "parallel" grid.
    B2 = 2053
    x2 = jax.random.normal(kx2, (B2, IN), dtype=jnp.float32)
    out2 = jax.block_until_ready(model_forward(x2, weight))
    ref2 = model_forward_ref(x2, weight)
    assert out2.shape == (B2, OUT)
    assert jnp.allclose(out2, ref2, atol=1e-5, rtol=1e-5)

    print("KERNEL_OK")
</pallas_src>

<mosaic_0001>
module attributes {stable_mosaic.version = 11 : i64} {
  func.func @_linear2_sigmoid_kernel(%arg0: i32, %arg1: memref<2xf32, #tpu.memory_space<smem>>, %arg2: memref<2x1x128xf32, #tpu.memory_space<vmem>>, %arg3: memref<1x1x128xf32, #tpu.memory_space<vmem>>) attributes {dimension_semantics = [#tpu.dimension_semantics<parallel>], iteration_bounds = array<i64: 1>, scalar_prefetch = 0 : i64, scratch_operands = 0 : i64, tpu.core_type = #tpu.core_type<tc>, window_params = [{transform_indices = @transform_0, window_bounds = array<i64: 2>}, {transform_indices = @transform_1, window_bounds = array<i64: 2, 1, 128>}, {transform_indices = @transform_2, window_bounds = array<i64: 1, 1, 128>}]} {
    %c0 = arith.constant 0 : index
    %0 = memref.load %arg1[%c0] : memref<2xf32, #tpu.memory_space<smem>>
    %c1 = arith.constant 1 : index
    %1 = memref.load %arg1[%c1] : memref<2xf32, #tpu.memory_space<smem>>
    %c0_0 = arith.constant 0 : index
    %c0_1 = arith.constant 0 : index
    %c0_2 = arith.constant 0 : index
    %2 = vector.load %arg2[%c0_0, %c0_1, %c0_2] : memref<2x1x128xf32, #tpu.memory_space<vmem>>, vector<1x1x128xf32>
    %3 = vector.shape_cast %2 : vector<1x1x128xf32> to vector<1x128xf32>
    %c1_3 = arith.constant 1 : index
    %c0_4 = arith.constant 0 : index
    %c0_5 = arith.constant 0 : index
    %4 = vector.load %arg2[%c1_3, %c0_4, %c0_5] : memref<2x1x128xf32, #tpu.memory_space<vmem>>, vector<1x1x128xf32>
    %5 = vector.shape_cast %4 : vector<1x1x128xf32> to vector<1x128xf32>
    %6 = vector.broadcast %0 : f32 to vector<1x128xf32>
    %7 = arith.mulf %3, %6 : vector<1x128xf32>
    %8 = vector.broadcast %1 : f32 to vector<1x128xf32>
    %9 = arith.mulf %5, %8 : vector<1x128xf32>
    %10 = arith.addf %7, %9 : vector<1x128xf32>
    %11 = arith.negf %10 : vector<1x128xf32>
    %12 = math.exp %11 : vector<1x128xf32>
    %cst = arith.constant 1.000000e+00 : f32
    %13 = vector.broadcast %cst : f32 to vector<1x128xf32>
    %14 = arith.addf %13, %12 : vector<1x128xf32>
    %15 = arith.divf %13, %14 : vector<1x128xf32>
    %c0_6 = arith.constant 0 : index
    %c0_7 = arith.constant 0 : index
    %c0_8 = arith.constant 0 : index
    %16 = vector.load %arg3[%c0_6, %c0_7, %c0_8] : memref<1x1x128xf32, #tpu.memory_space<vmem>>, vector<1x1x128xf32>
    %17 = vector.shape_cast %16 : vector<1x1x128xf32> to vector<1x128xf32>
    %18 = vector.shape_cast %15 : vector<1x128xf32> to vector<1x1x128xf32>
    tpu.vector_store %arg3[%c0_6, %c0_7, %c0_8], %18 {strides = array<i32>} : memref<1x1x128xf32, #tpu.memory_space<vmem>>, vector<1x1x128xf32>,
    return
  }
  func.func @transform_0(%arg0: i32) -> i32 {
    %c0_i32 = arith.constant 0 : i32
    %c0_i32_0 = arith.constant 0 : i32
    return %c0_i32 : i32
  }
  func.func @transform_1(%arg0: i32) -> (i32, i32, i32) {
    %c0_i32 = arith.constant 0 : i32
    %c0_i32_0 = arith.constant 0 : i32
    %c0_i32_1 = arith.constant 0 : i32
    return %c0_i32, %arg0, %c0_i32_0 : i32, i32, i32
  }
  func.func @transform_2(%arg0: i32) -> (i32, i32, i32) {
    %c0_i32 = arith.constant 0 : i32
    %c0_i32_0 = arith.constant 0 : i32
    %c0_i32_1 = arith.constant 0 : i32
    return %c0_i32, %arg0, %c0_i32_0 : i32, i32, i32
  }
}

</mosaic_0001>

<bundles_post_ra>
// kernel: tpu_custom_call.1
= control target key start
LH: loop header
LB: loop body
LE: loop exit
PB: predicated region body
PF: predicated region fallthrough
CT: control target
= control target key end

     0   :  { %7 = vsyncpa [#allocation4], 0  ;;  %s147_s0 = inlined_call_operand.hbm [shape: f32[2], index: 0, kind: input, shape index: {}]   ;;  %s148_s1 = inlined_call_operand.vmem [shape: f32[2,1,128], index: 1, kind: input, shape index: {}]   ;;  %s149_s2 = inlined_call_operand.hbm [shape: f32[1,1,128], index: 2, kind: output, shape index: {}]  }
   0x1   :  { %8 = vsyncpa [#allocation3], 0  ;;  %s64_s11 = scalar_lea.hbm %s147_s0, 16 }
   0x2   :  { %p65_p0 = scmp.ne.s32.totalorder %s147_s0, %s64_s11  ;;  %p68_p1 = scmp.lt.u32.totalorder %s64_s11, %s147_s0 }
   0x4   :  { %p70_p2 = pnand %p68_p1, %p65_p0 }
   0x6   :  { %73 = shalt.err (!%p70_p2)
}
   0x7   :  { %s100_s16 = smov [#allocation2]  }
   0x8   :  { %16 = dma.hbm_to_smem %s147_s0, 16, %s100_s16, [#allocation4]  }
   0x9   :  { %96 = dma.done.wait [#allocation4], 16  }
   0xa   :  { %97 = vsyncadd [#allocation4], 4294967280 }
   0xb   :  { %22 = sfence }
   0xc   :  { %s23_s19 = sld [smem:[#allocation2]]  ;;  %s55_s20 = sld [smem:[#allocation2 + $0x1]]  ;;  %v25_v0 = vld [vmem:[%s148_s1] sm:$0x1]  ;;  %v56_v1 = vld [vmem:[%s148_s1 + $0x1] sm:$0x1] }
   0xd   :  { %s101_s0 = smov [#allocation5]  }
   0xe   :  { %s46_s25 = sshll.u32 %s101_s0, 4  ;;  %s47_s25 = int_to_ptr.vmem [resolvable:$true] %s46_s25 }
   0xf   :  { %s74_s26 = scalar_lea.vmem %s47_s25, 16  ;;  %s78_s27 = scalar_lea.vmem %s47_s25, 32 }
  0x10   :  { %p75_p3 = scmp.ne.s32.totalorder %s47_s25, %s74_s26  ;;  %p79_p4 = scmp.lt.s32.totalorder %s47_s25, %s47_s25 }
  0x11   :  { %p80_p5 = scmp.lt.s32.totalorder %s78_s27, %s74_s26 }
  0x12   :  { %v28_v2 = vstv %s23_s19  ;;  %v30_v3 = vstv %s55_s20 }
  0x13   :  { %v29_v4 = vmul.f32 %v28_v2, %v25_v0  ;;  %v31_v5 = vmul.f32 %v56_v1, %v30_v3  ;;  %p81_p6 = por %p80_p5, %p79_p4 }
  0x15   :  { %v32_v6 = vadd.f32 %v31_v5, %v29_v4  ;;  %p82_p7 = pnand %p81_p6, %p75_p3 }
  0x17   :  { %v57_v7 = vmul.f32 -1.442695, %v32_v6 }
  0x19   :  { %60 = vpow2.f32 %v57_v7 }
  0x23   :  { %v61_v8 = vpop.eup %60 }
  0x24   :  { %v36_v9 = vadd.f32 1.0, %v61_v8 }
  0x26   :  { %62 = vrcp.f32 %v36_v9 }
  0x30   :  { %v63_v10 = vpop.eup %62 }
  0x31   :  { %39 = vst [vmem:[#allocation5] sm:$0x1] %v63_v10 }
  0x32   :  { %85 = shalt.err (!%p82_p7)
}
  0x33   :  { %s86_s29 = scalar_lea.hbm %s149_s2, 16 }
  0x34   :  { %p87_p8 = scmp.ne.s32.totalorder %s149_s2, %s86_s29  ;;  %p90_p9 = scmp.lt.u32.totalorder %s86_s29, %s149_s2 }
  0x36   :  { %p92_p10 = pnand %p90_p9, %p87_p8 }
  0x38   :  { %95 = shalt.err (!%p92_p10)
}
  0x39   :  { %49 = dma.vmem_to_hbm [thread:$0]  %s47_s25, 16, %s149_s2, [#allocation3]  }
  0x3a   :  { %98 = dma.done.wait [#allocation3], 16  }
  0x3b   :  { %99 = vsyncadd [#allocation3], 4294967280 }
  0x3c   :  { %53 = vsyncpa [#allocation3], 1 }
  0x3d   :  { %54 = vsyncpa [#allocation4], 1 }

</bundles_post_ra>
